<compile_context>
chip_gen: v6e
topology: v6e:2x2x1
jax: 0.10.0
libtpu: 0.0.40
codegen_flags: <defaults>
</compile_context>

<pallas_src>
import functools

import jax
import jax.numpy as jnp
from jax.experimental import pallas as pl
from jax.experimental.pallas import tpu as pltpu

_LANE = 128
_SUB = 8
_VMEM_LIMIT_BYTES = 32 * 1024 * 1024     # explicit scoped-VMEM limit (safe v5e/v6e/v7x)
_EW_BUFFER_BUDGET = 18 * 1024 * 1024     # double-buffered elementwise input streams
_CLS_BUFFER_BUDGET = 16 * 1024 * 1024    # double-buffered (TB, C) logits block
_MAX_BLOCK_ROWS = 8192
_MAX_CLS_ROWS = 2048


def _cdiv(a, b):
    return (a + b - 1) // b


def _round_up(a, b):
    return _cdiv(a, b) * b


# --------------------------------------------------------------------------
# Elementwise loss kernel: accumulates sum( loss(yhat, y) * weight ) over a
# (BLOCK_ROWS, 128) tile into a VMEM-resident (8, 128) output partial.
# --------------------------------------------------------------------------
def _ew_sum_kernel(yhat_ref, y_ref, *rest, kind, has_weight, n_valid,
                   block_rows, blocks_per_core, needs_mask):
    if has_weight:
        w_ref, out_ref = rest
    else:
        w_ref = None
        (out_ref,) = rest

    @pl.when(pl.program_id(1) == 0)
    def _():
        out_ref[...] = jnp.zeros_like(out_ref)

    p = yhat_ref[...].astype(jnp.float32)
    t = y_ref[...].astype(jnp.float32)

    if kind == "mse":
        l = (p - t) * (p - t)
    elif kind == "l1":
        l = jnp.abs(p - t)
    elif kind == "bce":
        # PyTorch clamps log terms at -100 to avoid inf * 0.
        logp = jnp.maximum(jnp.log(p), -100.0)
        log1mp = jnp.maximum(jnp.log(1.0 - p), -100.0)
        l = -(t * logp + (1.0 - t) * log1mp)
    elif kind == "bce_with_logit":
        # stable formulation: max(x,0) - x*y + log1p(exp(-|x|))
        l = jnp.maximum(p, 0.0) - p * t + jnp.log1p(jnp.exp(-jnp.abs(p)))
    else:
        raise ValueError(kind)

    if has_weight:
        l = l * w_ref[...].astype(jnp.float32)

    if needs_mask:
        # Ragged tail / grid overshoot: zero out elements whose flat index is
        # >= n_valid (they hold unspecified OOB or host-pad data).
        blk = pl.program_id(0) * blocks_per_core + pl.program_id(1)
        row0 = blk * block_rows
        row_idx = row0 + jax.lax.broadcasted_iota(jnp.int32, l.shape, 0)
        lane_idx = jax.lax.broadcasted_iota(jnp.int32, l.shape, 1)
        elem_idx = row_idx * _LANE + lane_idx
        l = jnp.where(elem_idx < n_valid, l, 0.0)

    # Fold the tall (BLOCK_ROWS, 128) tile into an (8, 128) vreg-shaped partial
    # with pure VPU adds; the final cross-lane/sublane reduce happens once in
    # the JAX wrapper.
    out_ref[...] += jnp.sum(l.reshape(-1, _SUB, _LANE), axis=0)


def _elementwise_loss_sum(kind, y_hat, y, weight=None):
    n = int(y_hat.size)

    # Weight handling: scalar weights factor out of the sum (no stream);
    # full-shape weights are streamed in native dtype.
    scalar_w = None
    stream_w = None
    if weight is not None:
        w = jnp.asarray(weight)
        if w.size == 1:
            scalar_w = w.reshape(()).astype(jnp.float32)
        elif w.shape == y_hat.shape:
            stream_w = w
        else:
            # TODO(synk): per-channel weights could be kept resident in VMEM
            # instead of materializing a full HBM broadcast.
            stream_w = jnp.broadcast_to(w, y_hat.shape)

    if y.shape != y_hat.shape:
        # TODO(synk): avoid materializing broadcasts for small targets.
        y = jnp.broadcast_to(y, y_hat.shape)

    # Lane-dense (rows, 128) view in the *native* dtype.  When n % 128 == 0
    # (the common case) this is a free bitcast: no extra HBM pass.
    rows = _cdiv(n, _LANE)
    pad = rows * _LANE - n

    def _prep(a):
        a = a.reshape(-1)
        if pad:
            a = jnp.pad(a, (0, pad))   # tail values are masked in-kernel
        return a.reshape(rows, _LANE)

    operands = [_prep(y_hat), _prep(y)]
    if stream_w is not None:
        operands.append(_prep(stream_w))
    has_weight = stream_w is not None

    # Biggest lane-dense tile that keeps all double-buffered streams inside
    # the VMEM budget (accounts for the actual per-stream dtypes).
    bytes_per_row = sum(_LANE * jnp.dtype(a.dtype).itemsize for a in operands)
    block_rows = _EW_BUFFER_BUDGET // (2 * bytes_per_row)
    block_rows = max(_SUB, min(_MAX_BLOCK_ROWS,
                               (block_rows // _SUB) * _SUB,
                               _round_up(rows, _SUB)))

    total_blocks = _cdiv(rows, block_rows)
    # Always split the leading "parallel" axis two ways when there is more
    # than one block so both v7x TensorCores get work (harmless elsewhere).
    n_cores = 2 if total_blocks >= 2 else 1
    blocks_per_core = _cdiv(total_blocks, n_cores)
    needs_mask = (n != n_cores * blocks_per_core * block_rows * _LANE)

    def in_map(c, i):
        # Clamp so any overshoot block stays in-bounds; its contribution is
        # zeroed by the in-kernel element mask.
        return (jnp.minimum(c * blocks_per_core + i, total_blocks - 1), 0)

    in_specs = [pl.BlockSpec((block_rows, _LANE), in_map) for _ in operands]

    out = pl.pallas_call(
        functools.partial(
            _ew_sum_kernel, kind=kind, has_weight=has_weight, n_valid=n,
            block_rows=block_rows, blocks_per_core=blocks_per_core,
            needs_mask=needs_mask),
        out_shape=jax.ShapeDtypeStruct((_SUB * n_cores, _LANE), jnp.float32),
        grid_spec=pltpu.PrefetchScalarGridSpec(
            num_scalar_prefetch=0,
            grid=(n_cores, blocks_per_core),
            in_specs=in_specs,
            out_specs=pl.BlockSpec((_SUB, _LANE), lambda c, i: (c, 0)),
        ),
        compiler_params=pltpu.CompilerParams(
            dimension_semantics=("parallel", "arbitrary"),
            vmem_limit_bytes=_VMEM_LIMIT_BYTES),
    )(*operands)

    s = jnp.sum(out)
    if scalar_w is not None:
        s = s * scalar_w
    return s


# --------------------------------------------------------------------------
# Classification loss kernel (ce / nll): per-row loss on (N, C) logits /
# log-probs with an int32 target column; accumulates weighted per-row loss
# and target-weight partials into resident (TB, 1) output blocks (per core).
# Invalid rows (ragged tail / grid overshoot) are masked in-kernel.
# --------------------------------------------------------------------------
def _cls_kernel(x_ref, tgt_ref, *rest, is_ce, has_weight, n_valid, tb,
                blocks_per_core, needs_mask):
    if has_weight:
        wvec_ref, out_l_ref, out_w_ref = rest
    else:
        wvec_ref = None
        out_l_ref, out_w_ref = rest

    @pl.when(pl.program_id(1) == 0)
    def _():
        out_l_ref[...] = jnp.zeros_like(out_l_ref)
        out_w_ref[...] = jnp.zeros_like(out_w_ref)

    x = x_ref[...].astype(jnp.float32)             # (TB, C)
    t = tgt_ref[...]                                # (TB, 1) int32

    col = jax.lax.broadcasted_iota(jnp.int32, x.shape, 1)
    onehot = (col == t).astype(jnp.float32)                     # (TB, C)
    picked = jnp.sum(x * onehot, axis=-1, keepdims=True)        # x[row, tgt]
    if has_weight:
        w = wvec_ref[...].astype(jnp.float32)                   # (1, C)
        wt = jnp.sum(w * onehot, axis=-1, keepdims=True)        # weight[tgt]
    else:
        wt = jnp.ones_like(picked)

    if is_ce:
        mx = jnp.max(x, axis=-1, keepdims=True)
        lse = mx + jnp.log(jnp.sum(jnp.exp(x - mx), axis=-1, keepdims=True))
        per = lse - picked                                      # -log softmax[tgt]
    else:  # nll: input already log-probabilities
        per = -picked

    contrib_l = per * wt
    contrib_w = wt
    if needs_mask:
        blk = pl.program_id(0) * blocks_per_core + pl.program_id(1)
        row_idx = blk * tb + jax.lax.broadcasted_iota(jnp.int32, (tb, 1), 0)
        valid = row_idx < n_valid
        contrib_l = jnp.where(valid, contrib_l, 0.0)
        contrib_w = jnp.where(valid, contrib_w, 0.0)

    out_l_ref[...] += contrib_l
    out_w_ref[...] += contrib_w


def _classification_loss(kind, logits, targets, weight):
    n, c = logits.shape
    has_weight = weight is not None

    # Row-block size budgeted against the double-buffered (TB, C) block in
    # its native dtype.
    row_bytes = c * jnp.dtype(logits.dtype).itemsize
    tb = (_CLS_BUFFER_BUDGET // (2 * row_bytes))
    tb = max(_SUB, min(_MAX_CLS_ROWS, (tb // _SUB) * _SUB, _round_up(n, _SUB)))

    total_blocks = _cdiv(n, tb)
    n_cores = 2 if total_blocks >= 2 else 1
    blocks_per_core = _cdiv(total_blocks, n_cores)
    needs_mask = (n != n_cores * blocks_per_core * tb)

    tgt2 = targets.astype(jnp.int32).reshape(n, 1)

    def in_map(ci, i):
        return (jnp.minimum(ci * blocks_per_core + i, total_blocks - 1), 0)

    operands = [logits, tgt2]
    in_specs = [pl.BlockSpec((tb, c), in_map),
                pl.BlockSpec((tb, 1), in_map)]
    if has_weight:
        operands.append(jnp.asarray(weight).reshape(1, c))
        in_specs.append(pl.BlockSpec((1, c), lambda ci, i: (0, 0)))

    out_l, out_w = pl.pallas_call(
        functools.partial(
            _cls_kernel, is_ce=(kind == "ce"), has_weight=has_weight,
            n_valid=n, tb=tb, blocks_per_core=blocks_per_core,
            needs_mask=needs_mask),
        out_shape=(jax.ShapeDtypeStruct((n_cores * tb, 1), jnp.float32),
                   jax.ShapeDtypeStruct((n_cores * tb, 1), jnp.float32)),
        grid_spec=pltpu.PrefetchScalarGridSpec(
            num_scalar_prefetch=0,
            grid=(n_cores, blocks_per_core),
            in_specs=in_specs,
            out_specs=[pl.BlockSpec((tb, 1), lambda ci, i: (ci, 0)),
                       pl.BlockSpec((tb, 1), lambda ci, i: (ci, 0))],
        ),
        compiler_params=pltpu.CompilerParams(
            dimension_semantics=("parallel", "arbitrary"),
            vmem_limit_bytes=_VMEM_LIMIT_BYTES),
    )(*operands)
    return jnp.sum(out_l), jnp.sum(out_w)


# --------------------------------------------------------------------------
# JAX/Pallas mirror of the PyTorch `Loss` module.
# --------------------------------------------------------------------------
class Loss:
    _KNOWN = ("bce", "bce_with_logit", "mse", "l1", "ce", "nll")

    def __init__(self, loss, weight=None, reduction="sum"):
        self.kind = loss if loss in self._KNOWN else None
        self.weight = weight
        self.reduction = reduction

    def is_classification_task(self):
        return self.kind in ("ce", "nll")

    def __call__(self, y_hat, y=None):
        if self.kind is None:
            # forward() fallback: y_hat.mean().  Routed through XLA's native
            # reduce (already at HBM roofline; no pad/copy/launch overhead).
            return jnp.mean(y_hat)

        if self.is_classification_task():
            y = y.astype(jnp.int32)  # y.long()
            loss_sum, w_sum = _classification_loss(self.kind, y_hat, y,
                                                   self.weight)
            if self.reduction == "sum":
                return loss_sum
            if self.reduction == "mean":
                return loss_sum / w_sum
            raise NotImplementedError("reduction='none' not supported")

        s = _elementwise_loss_sum(self.kind, y_hat, y, self.weight)
        if self.reduction == "sum":
            return s
        if self.reduction == "mean":
            return s / y_hat.size
        raise NotImplementedError("reduction='none' not supported")


# --------------------------------------------------------------------------
# Pure-JAX references for sanity checking.
# --------------------------------------------------------------------------
def _ref_loss(kind, y_hat, y, weight=None, reduction="sum"):
    p = y_hat.astype(jnp.float32)
    t = y.astype(jnp.float32)
    if kind == "mse":
        l = (p - t) ** 2
    elif kind == "l1":
        l = jnp.abs(p - t)
    elif kind == "bce":
        l = -(t * jnp.maximum(jnp.log(p), -100.0)
              + (1.0 - t) * jnp.maximum(jnp.log(1.0 - p), -100.0))
    elif kind == "bce_with_logit":
        l = jnp.maximum(p, 0.0) - p * t + jnp.log1p(jnp.exp(-jnp.abs(p)))
    if weight is not None:
        l = l * weight.astype(jnp.float32)
    return jnp.sum(l) if reduction == "sum" else jnp.mean(l)


def _ref_class_loss(kind, inputs, targets, weight=None, reduction="sum"):
    x = inputs.astype(jnp.float32)
    picked = jnp.take_along_axis(x, targets[:, None], axis=-1)[:, 0]
    if kind == "ce":
        per = jax.nn.logsumexp(x, axis=-1) - picked
    else:  # nll: inputs are log-probabilities
        per = -picked
    if weight is None:
        wt = jnp.ones_like(per)
    else:
        wt = weight.astype(jnp.float32)[targets]
    if reduction == "sum":
        return jnp.sum(per * wt)
    return jnp.sum(per * wt) / jnp.sum(wt)


if __name__ == "__main__":
    key = jax.random.PRNGKey(0)
    k1, k2, k3, k4, k5, k6 = jax.random.split(key, 6)

    # Regression-style inputs (NCHW): batch=2, channels=4, spatial=16x16.
    x = jax.random.normal(k1, (2, 4, 16, 16), jnp.float32)
    y = jax.random.normal(k2, (2, 4, 16, 16), jnp.float32)
    p01 = jax.nn.sigmoid(x)                         # probabilities for BCE
    t01 = (jax.nn.sigmoid(y) > 0.5).astype(jnp.float32)
    w_el = jax.random.uniform(k5, x.shape, jnp.float32) + 0.5

    # Classification inputs: N=8 samples, C=32 classes.
    logits = jax.random.normal(k3, (8, 32), jnp.float32)
    targets = jax.random.randint(k4, (8,), 0, 32)
    logprobs = jax.nn.log_softmax(logits, axis=-1)
    w_cls = jax.random.uniform(k6, (32,), jnp.float32) + 0.5

    checks = []

    # mse / l1 / bce / bce_with_logit (sum reduction, the module default)
    for kind, yh, yt in [("mse", x, y), ("l1", x, y),
                         ("bce", p01, t01), ("bce_with_logit", x, t01)]:
        got = Loss(kind, reduction="sum")(yh, yt)
        want = _ref_loss(kind, yh, yt, None, "sum")
        checks.append((kind, got, want))

    # weighted bce (sum)
    got = Loss("bce", weight=w_el, reduction="sum")(p01, t01)
    checks.append(("bce/weighted", got, _ref_loss("bce", p01, t01, w_el, "sum")))

    # native bf16 streaming (inputs kept bf16 in HBM, cast in-kernel)
    xb = x.astype(jnp.bfloat16)
    yb = y.astype(jnp.bfloat16)
    got = Loss("mse", reduction="sum")(xb, yb)
    checks.append(("mse/bf16", got, _ref_loss("mse", xb, yb, None, "sum")))

    # ragged elementwise shape (exercises in-kernel tail masking)
    xr = jax.random.normal(k1, (3, 5, 7), jnp.float32)
    yr = jax.random.normal(k2, (3, 5, 7), jnp.float32)
    got = Loss("mse", reduction="sum")(xr, yr)
    checks.append(("mse/ragged", got, _ref_loss("mse", xr, yr, None, "sum")))

    # ce / nll (sum and mean) -- reference gets the same input as the kernel.
    for kind, yh in [("ce", logits), ("nll", logprobs)]:
        for red in ("sum", "mean"):
            got = Loss(kind, reduction=red)(yh, targets)
            want = _ref_class_loss(kind, yh, targets, None, red)
            checks.append((f"{kind}/{red}", got, want))

    # weighted ce (mean): divides by sum of per-sample class weights.
    got = Loss("ce", weight=w_cls, reduction="mean")(logits, targets)
    checks.append(("ce/weighted_mean", got,
                   _ref_class_loss("ce", logits, targets, w_cls, "mean")))

    # ragged ce (N not a multiple of the row block; exercises 2-core split +
    # in-kernel row masking)
    logits_r = jax.random.normal(k3, (10, 32), jnp.float32)
    targets_r = jax.random.randint(k4, (10,), 0, 32)
    got = Loss("ce", reduction="mean")(logits_r, targets_r)
    checks.append(("ce/ragged_mean", got,
                   _ref_class_loss("ce", logits_r, targets_r, None, "mean")))

    # loss=None branch -> y_hat.mean()
    got = Loss("unknown_loss")(x, y)
    checks.append(("mean_fallback", got, jnp.mean(x)))

    ok = True
    for name, got, want in checks:
        got = jax.block_until_ready(got)
        if not jnp.allclose(got, want, rtol=1e-4, atol=1e-4):
            ok = False
            print(f"MISMATCH {name}: got {got}, want {want}")

    if ok:
        print("KERNEL_OK")
</pallas_src>

<mosaic_0001>
module attributes {stable_mosaic.version = 11 : i64} {
  func.func @_ew_sum_kernel(%arg0: i32, %arg1: i32, %arg2: memref<16x128xf32, #tpu.memory_space<vmem>>, %arg3: memref<16x128xf32, #tpu.memory_space<vmem>>, %arg4: memref<8x128xf32, #tpu.memory_space<vmem>>) attributes {dimension_semantics = [#tpu.dimension_semantics<parallel>, #tpu.dimension_semantics<arbitrary>], iteration_bounds = array<i64: 1, 1>, scalar_prefetch = 0 : i64, scratch_operands = 0 : i64, tpu.core_type = #tpu.core_type<tc>, window_params = [{transform_indices = @transform_0, window_bounds = array<i64: 16, 128>}, {transform_indices = @transform_1, window_bounds = array<i64: 16, 128>}, {transform_indices = @transform_2, window_bounds = array<i64: 8, 128>}]} {
    %c0_i32 = arith.constant 0 : i32
    %0 = arith.cmpi eq, %arg1, %c0_i32 : i32
    %1 = arith.extui %0 : i1 to i32
    %c0_i32_0 = arith.constant 0 : i32
    %2 = arith.cmpi ne, %1, %c0_i32_0 : i32
    scf.if %2 {
      %cst_8 = arith.constant 0.000000e+00 : f32
      %13 = vector.broadcast %cst_8 : f32 to vector<8x128xf32>
      %c0_9 = arith.constant 0 : index
      %c0_10 = arith.constant 0 : index
      %14 = vector.load %arg4[%c0_9, %c0_10] : memref<8x128xf32, #tpu.memory_space<vmem>>, vector<8x128xf32>
      tpu.vector_store %arg4[%c0_9, %c0_10], %13 {strides = array<i32>} : memref<8x128xf32, #tpu.memory_space<vmem>>, vector<8x128xf32>,
    } else {
    }
    %c0 = arith.constant 0 : index
    %c0_1 = arith.constant 0 : index
    %3 = vector.load %arg2[%c0, %c0_1] : memref<16x128xf32, #tpu.memory_space<vmem>>, vector<16x128xf32>
    %c0_2 = arith.constant 0 : index
    %c0_3 = arith.constant 0 : index
    %4 = vector.load %arg3[%c0_2, %c0_3] : memref<16x128xf32, #tpu.memory_space<vmem>>, vector<16x128xf32>
    %5 = arith.subf %3, %4 : vector<16x128xf32>
    %6 = arith.subf %3, %4 : vector<16x128xf32>
    %7 = arith.mulf %5, %6 : vector<16x128xf32>
    %c0_4 = arith.constant 0 : index
    %c0_5 = arith.constant 0 : index
    %8 = vector.load %arg4[%c0_4, %c0_5] : memref<8x128xf32, #tpu.memory_space<vmem>>, vector<8x128xf32>
    %9 = vector.shape_cast %7 : vector<16x128xf32> to vector<2x8x128xf32>
    %cst = arith.constant dense<0.000000e+00> : vector<8x128xf32>
    %10 = vector.multi_reduction <add>, %9, %cst [0] : vector<2x8x128xf32> to vector<8x128xf32>
    %11 = arith.addf %8, %10 : vector<8x128xf32>
    %c0_6 = arith.constant 0 : index
    %c0_7 = arith.constant 0 : index
    %12 = vector.load %arg4[%c0_6, %c0_7] : memref<8x128xf32, #tpu.memory_space<vmem>>, vector<8x128xf32>
    tpu.vector_store %arg4[%c0_6, %c0_7], %11 {strides = array<i32>} : memref<8x128xf32, #tpu.memory_space<vmem>>, vector<8x128xf32>,
    return
  }
  func.func @transform_0(%arg0: i32, %arg1: i32) -> (i32, i32) {
    %c1_i32 = arith.constant 1 : i32
    %0 = arith.muli %arg0, %c1_i32 : i32
    %1 = arith.addi %0, %arg1 : i32
    %c0_i32 = arith.constant 0 : i32
    %2 = arith.minsi %1, %c0_i32 : i32
    %c0_i32_0 = arith.constant 0 : i32
    %c0_i32_1 = arith.constant 0 : i32
    return %2, %c0_i32_0 : i32, i32
  }
  func.func @transform_1(%arg0: i32, %arg1: i32) -> (i32, i32) {
    %c1_i32 = arith.constant 1 : i32
    %0 = arith.muli %arg0, %c1_i32 : i32
    %1 = arith.addi %0, %arg1 : i32
    %c0_i32 = arith.constant 0 : i32
    %2 = arith.minsi %1, %c0_i32 : i32
    %c0_i32_0 = arith.constant 0 : i32
    %c0_i32_1 = arith.constant 0 : i32
    return %2, %c0_i32_0 : i32, i32
  }
  func.func @transform_2(%arg0: i32, %arg1: i32) -> (i32, i32) {
    %c0_i32 = arith.constant 0 : i32
    %c0_i32_0 = arith.constant 0 : i32
    return %arg0, %c0_i32 : i32, i32
  }
}

</mosaic_0001>

<bundles_post_ra>
// kernel: tpu_custom_call.1
= control target key start
LH: loop header
LB: loop body
LE: loop exit
PB: predicated region body
PF: predicated region fallthrough
CT: control target
= control target key end

     0   :  { %7 = vsyncpa [#allocation3], 0  ;;  %s198_s0 = inlined_call_operand.hbm [shape: f32[16,128], index: 0, kind: input, shape index: {}]   ;;  %s199_s1 = inlined_call_operand.hbm [shape: f32[16,128], index: 1, kind: input, shape index: {}]   ;;  %s200_s2 = inlined_call_operand.hbm [shape: f32[8,128], index: 2, kind: output, shape index: {}]  }
   0x1   :  { %8 = vsyncpa [#allocation6], 0 }
   0x2   :  { %9 = vsyncpa [#allocation4], 0  ;;  %s169_s9 = smov [#allocation2]  }
   0x3   :  { %s21_s10 = sshll.u32 %s169_s9, 4  ;;  %s22_s10 = int_to_ptr.vmem [resolvable:$true] %s21_s10 }
   0x4   :  { %s111_s11 = scalar_lea.vmem %s22_s10, 256  ;;  %p116_p1 = scmp.lt.s32.totalorder %s22_s10, %s22_s10 }
   0x5   :  { %p112_p0 = scmp.ne.s32.totalorder %s22_s10, %s111_s11  ;;  %p117_p2 = scmp.lt.s32.totalorder %s111_s11, %s111_s11 }
   0x7   :  { %p118_p3 = por %p117_p2, %p116_p1 }
   0x9   :  { %p119_p4 = pnand %p118_p3, %p112_p0 }
   0xb   :  { %122 = shalt.err (!%p119_p4)
}
   0xc   :  { %s170_s12 = smov 128   ;;  %s171_s13 = smov 8  }
   0xd   :  { %27 = dma.hbm_to_vmem [thread:$0]  %s198_s0, 256, %s22_s10, [#allocation3], %s170_s12, %s170_s12, %s171_s13  }
   0xe   :  { %s172_s16 = smov [#allocation5]  }
   0xf   :  { %s39_s17 = sshll.u32 %s172_s16, 4  ;;  %s40_s17 = int_to_ptr.vmem [resolvable:$true] %s39_s17 }
  0x10   :  { %s131_s18 = scalar_lea.vmem %s40_s17, 256  ;;  %p136_p6 = scmp.lt.s32.totalorder %s40_s17, %s40_s17 }
  0x11   :  { %p132_p5 = scmp.ne.s32.totalorder %s40_s17, %s131_s18  ;;  %p137_p7 = scmp.lt.s32.totalorder %s131_s18, %s131_s18 }
  0x13   :  { %p138_p8 = por %p137_p7, %p136_p6 }
  0x15   :  { %p139_p9 = pnand %p138_p8, %p132_p5 }
  0x17   :  { %142 = shalt.err (!%p139_p9)
}
  0x18   :  { %45 = dma.hbm_to_vmem [thread:$0]  %s199_s1, 256, %s40_s17, [#allocation6], %s170_s12, %s170_s12, %s171_s13  }
  0x19   :  { %163 = dma.done.wait [#allocation3], 256  }
  0x1a   :  { %164 = vsyncadd [#allocation3], 4294967040 }
  0x1b   :  { %165 = dma.done.wait [#allocation6], 256  }
  0x1c   :  { %166 = vsyncadd [#allocation6], 4294967040  ;;  %v65_v0 = vld [vmem:[#allocation2] sm:$0xff]  ;;  %v66_v1 = vld [vmem:[#allocation2 + $0x8] sm:$0xff]  ;;  %s173_s0 = smov [#allocation7]  }
  0x1d   :  { %v67_v2 = vld [vmem:[#allocation5] sm:$0xff]  ;;  %v68_v3 = vld [vmem:[#allocation5 + $0x8] sm:$0xff]  ;;  %s83_s21 = sshll.u32 %s173_s0, 4  ;;  %s84_s21 = int_to_ptr.vmem [resolvable:$true] %s83_s21 }
  0x1e   :  { %v69_v4 = vsub.f32 %v65_v0, %v67_v2  ;;  %v70_v5 = vsub.f32 %v66_v1, %v68_v3  ;;  %s143_s22 = scalar_lea.vmem %s84_s21, 128  ;;  %p148_p11 = scmp.lt.s32.totalorder %s84_s21, %s84_s21 }
  0x1f   :  { %p144_p10 = scmp.ne.s32.totalorder %s84_s21, %s143_s22  ;;  %p149_p12 = scmp.lt.s32.totalorder %s143_s22, %s143_s22 }
  0x20   :  { %v71_v6 = vmul.f32 %v69_v4, %v69_v4  ;;  %v72_v7 = vmul.f32 %v70_v5, %v70_v5 }
  0x21   :  { %p150_p13 = por %p149_p12, %p148_p11 }
  0x22   :  { %v74_v8 = vadd.f32 %v72_v7, %v71_v6 }
  0x23   :  { %p151_p0 = pnand %p150_p13, %p144_p10 }
  0x24   :  { %76 = vst [vmem:[#allocation7] sm:$0xff] %v74_v8 }
  0x25   :  { %154 = shalt.err (!%p151_p0)
}
  0x26   :  { %86 = dma.vmem_to_hbm [thread:$0]  %s84_s21, 128, %s200_s2, [#allocation4]  }
  0x27   :  { %167 = dma.done.wait [#allocation4], 128  }
  0x28   :  { %168 = vsyncadd [#allocation4], 4294967168 }
  0x29   :  { %90 = vsyncpa [#allocation3], 1 }
  0x2a   :  { %91 = vsyncpa [#allocation6], 1 }
  0x2b   :  { %92 = vsyncpa [#allocation4], 1 }

</bundles_post_ra>
